<compile_context>
chip_gen: v7x
topology: tpu7x:2x2x1
jax: 0.10.0
libtpu: 0.0.40
codegen_flags: <defaults>
</compile_context>

<pallas_src>
import functools

import jax
import jax.numpy as jnp
from jax.experimental import pallas as pl
from jax.experimental.pallas import tpu as pltpu

LANE = 128


def _orthogonal(key, shape, gain=1.0, dtype=jnp.float32):
    """Orthogonal init mirroring nn.init.orthogonal_ semantics (not bit-matching)."""
    rows, cols = shape
    flat_shape = (max(rows, cols), min(rows, cols))
    a = jax.random.normal(key, flat_shape, dtype)
    q, r = jnp.linalg.qr(a)
    d = jnp.sign(jnp.diagonal(r))
    d = jnp.where(d == 0, 1.0, d)  # guard measure-zero sign(0) case
    q = q * d[None, :]
    if rows < cols:
        q = q.T
    return gain * q[:rows, :cols]


def actor_gaussian_kernel(s_ref, w1_ref, w2_ref, w3_ref, b_ref, o_ref, *,
                          max_action, hidden_width):
    out_pad = o_ref.shape[1]
    b = b_ref[...]                               # (8, width) f32; rows 0/1/2 = b1/b2/b3
    x = s_ref[...].astype(jnp.bfloat16)          # (TB, state_dim)

    # fc1 + tanh (bf16 MXU inputs, f32 accumulate, f32 tanh)
    h1 = jnp.tanh(
        jnp.dot(x, w1_ref[...], preferred_element_type=jnp.float32)
        + b[0:1, :hidden_width])
    # fc2 + tanh
    h2 = jnp.tanh(
        jnp.dot(h1.astype(jnp.bfloat16), w2_ref[...],
                preferred_element_type=jnp.float32)
        + b[1:2, :hidden_width])
    # mean_layer + tanh, scaled by max_action (output lanes padded to 128)
    mean = max_action * jnp.tanh(
        jnp.dot(h2.astype(jnp.bfloat16), w3_ref[...],
                preferred_element_type=jnp.float32)
        + b[2:3, :out_pad])
    o_ref[...] = mean


def actor_gaussian_forward(s, kernel_params, max_action, action_dim, *, tb=128):
    """Fused MLP forward: tanh(fc1) -> tanh(fc2) -> max_action * tanh(mean_layer)."""
    w1, w2, w3p, b_packed = kernel_params
    B, state_dim = s.shape
    hidden = w1.shape[1]
    out_pad = w3p.shape[1]

    # Pad batch to a multiple of the batch tile.
    B_pad = pl.cdiv(B, tb) * tb
    if B_pad != B:
        s = jnp.pad(s, ((0, B_pad - B), (0, 0)))

    kernel = functools.partial(actor_gaussian_kernel,
                               max_action=float(max_action),
                               hidden_width=hidden)

    out = pl.pallas_call(
        kernel,
        out_shape=jax.ShapeDtypeStruct((B_pad, out_pad), jnp.float32),
        grid=(B_pad // tb,),
        in_specs=[
            pl.BlockSpec((tb, state_dim), lambda i: (i, 0)),   # batch-tiled states
            pl.BlockSpec(w1.shape, lambda i: (0, 0)),          # weights resident
            pl.BlockSpec(w2.shape, lambda i: (0, 0)),
            pl.BlockSpec(w3p.shape, lambda i: (0, 0)),
            pl.BlockSpec(b_packed.shape, lambda i: (0, 0)),    # packed biases resident
        ],
        out_specs=pl.BlockSpec((tb, out_pad), lambda i: (i, 0)),
        compiler_params=pltpu.CompilerParams(
            dimension_semantics=("parallel",)),
    )(s, w1, w2, w3p, b_packed)

    return out[:B, :action_dim]


def init_params(key, state_dim, hidden_width, action_dim):
    k1, k2, k3 = jax.random.split(key, 3)
    # PyTorch nn.Linear weight is (out, in); build that, then transpose to (in, out).
    w1 = _orthogonal(k1, (hidden_width, state_dim), gain=1.0).T      # (state, hidden)
    w2 = _orthogonal(k2, (hidden_width, hidden_width), gain=1.0).T   # (hidden, hidden)
    w3 = _orthogonal(k3, (action_dim, hidden_width), gain=0.01).T    # (hidden, action)

    out_pad = max(LANE, pl.cdiv(action_dim, LANE) * LANE)
    bias_width = max(out_pad, pl.cdiv(hidden_width, LANE) * LANE)

    # Lane-dense mean layer: pad output columns to a full 128-lane block.
    w3p = jnp.zeros((hidden_width, out_pad), jnp.float32).at[:, :action_dim].set(w3)

    # Biases are zero-init (nn.init.constant_(bias, 0)); packed into one array:
    # row 0 = b1, row 1 = b2, row 2 = b3 (padded).
    b_packed = jnp.zeros((8, bias_width), jnp.float32)

    kernel_params = (w1.astype(jnp.bfloat16),
                     w2.astype(jnp.bfloat16),
                     w3p.astype(jnp.bfloat16),
                     b_packed)
    ref_params = (w1, w2, w3)
    return kernel_params, ref_params


def reference_forward(s, ref_params, max_action):
    w1, w2, w3 = ref_params
    h1 = jnp.tanh(s @ w1)                    # biases are zero at init
    h2 = jnp.tanh(h1 @ w2)
    return max_action * jnp.tanh(h2 @ w3)


if __name__ == "__main__":
    # Shapes implied by the module (PPO policy): state_dim=16, hidden=32, action_dim=4.
    # Batch chosen so the batch grid (TB=128) has an even number of tiles.
    batch, state_dim, hidden_width, action_dim = 256, 16, 32, 4
    max_action = 2.0
    TB = 128

    key = jax.random.PRNGKey(0)
    k_param, k_input = jax.random.split(key)

    kernel_params, ref_params = init_params(k_param, state_dim, hidden_width, action_dim)
    s = jax.random.normal(k_input, (batch, state_dim), jnp.float32)

    out = actor_gaussian_forward(s, kernel_params, max_action, action_dim, tb=TB)
    out = jax.block_until_ready(out)

    ref = reference_forward(s, ref_params, max_action)
    assert out.shape == (batch, action_dim)
    # Looser tolerance because matmul inputs are bf16 (f32 accumulation).
    assert jnp.allclose(out, ref, atol=3e-2, rtol=3e-2), float(jnp.abs(out - ref).max())

    # log_std exists in the module but does not participate in forward();
    # it would only be used by get_dist(). Kept for parity.
    log_std = jnp.zeros((1, action_dim), jnp.float32)  # noqa: F841
    # TODO(synk): get_dist() (Normal(mean, exp(log_std))) is a distribution object,
    # not a tensor op — left to plain JAX outside the kernel.

    print("KERNEL_OK")
</pallas_src>

<mosaic_0001>
module attributes {stable_mosaic.version = 11 : i64} {
  func.func @actor_gaussian_kernel(%arg0: i32, %arg1: memref<128x16xf32, #tpu.memory_space<vmem>>, %arg2: memref<16x32xbf16, #tpu.memory_space<vmem>>, %arg3: memref<32x32xbf16, #tpu.memory_space<vmem>>, %arg4: memref<32x128xbf16, #tpu.memory_space<vmem>>, %arg5: memref<8x128xf32, #tpu.memory_space<vmem>>, %arg6: memref<128x128xf32, #tpu.memory_space<vmem>>) attributes {dimension_semantics = [#tpu.dimension_semantics<parallel>], iteration_bounds = array<i64: 2>, scalar_prefetch = 0 : i64, scratch_operands = 0 : i64, tpu.core_type = #tpu.core_type<tc>, window_params = [{transform_indices = @transform_0, window_bounds = array<i64: 128, 16>}, {pipeline_mode = #tpu.pipeline_mode<synchronous>, transform_indices = @transform_1, window_bounds = array<i64: 16, 32>}, {pipeline_mode = #tpu.pipeline_mode<synchronous>, transform_indices = @transform_2, window_bounds = array<i64: 32, 32>}, {pipeline_mode = #tpu.pipeline_mode<synchronous>, transform_indices = @transform_3, window_bounds = array<i64: 32, 128>}, {pipeline_mode = #tpu.pipeline_mode<synchronous>, transform_indices = @transform_4, window_bounds = array<i64: 8, 128>}, {transform_indices = @transform_5, window_bounds = array<i64: 128, 128>}]} {
    %c0 = arith.constant 0 : index
    %c0_0 = arith.constant 0 : index
    %0 = vector.load %arg5[%c0, %c0_0] : memref<8x128xf32, #tpu.memory_space<vmem>>, vector<8x128xf32>
    %c0_1 = arith.constant 0 : index
    %c0_2 = arith.constant 0 : index
    %1 = vector.load %arg1[%c0_1, %c0_2] : memref<128x16xf32, #tpu.memory_space<vmem>>, vector<128x16xf32>
    %2 = arith.truncf %1 : vector<128x16xf32> to vector<128x16xbf16>
    %c0_3 = arith.constant 0 : index
    %c0_4 = arith.constant 0 : index
    %3 = vector.load %arg2[%c0_3, %c0_4] : memref<16x32xbf16, #tpu.memory_space<vmem>>, vector<16x32xbf16>
    %cst = arith.constant dense<0.000000e+00> : vector<128x32xf32>
    %4 = tpu.matmul %2, %3, %cst {dimension_numbers = #tpu.dot_dimension_numbers<[1], [0], [0], [1], [0, 0, 1, 1], [], []>} : vector<128x16xbf16>, vector<16x32xbf16>, vector<128x32xf32> -> vector<128x32xf32>
    %5 = vector.extract_strided_slice %0 {offsets = [0, 0], sizes = [1, 32], strides = [1, 1]} : vector<8x128xf32> to vector<1x32xf32>
    %6 = vector.broadcast %5 : vector<1x32xf32> to vector<128x32xf32>
    %7 = arith.addf %4, %6 : vector<128x32xf32>
    %8 = math.tanh %7 : vector<128x32xf32>
    %9 = arith.truncf %8 : vector<128x32xf32> to vector<128x32xbf16>
    %c0_5 = arith.constant 0 : index
    %c0_6 = arith.constant 0 : index
    %10 = vector.load %arg3[%c0_5, %c0_6] : memref<32x32xbf16, #tpu.memory_space<vmem>>, vector<32x32xbf16>
    %cst_7 = arith.constant dense<0.000000e+00> : vector<128x32xf32>
    %11 = tpu.matmul %9, %10, %cst_7 {dimension_numbers = #tpu.dot_dimension_numbers<[1], [0], [0], [1], [0, 0, 1, 1], [], []>} : vector<128x32xbf16>, vector<32x32xbf16>, vector<128x32xf32> -> vector<128x32xf32>
    %12 = vector.extract_strided_slice %0 {offsets = [1, 0], sizes = [1, 32], strides = [1, 1]} : vector<8x128xf32> to vector<1x32xf32>
    %13 = vector.broadcast %12 : vector<1x32xf32> to vector<128x32xf32>
    %14 = arith.addf %11, %13 : vector<128x32xf32>
    %15 = math.tanh %14 : vector<128x32xf32>
    %16 = arith.truncf %15 : vector<128x32xf32> to vector<128x32xbf16>
    %c0_8 = arith.constant 0 : index
    %c0_9 = arith.constant 0 : index
    %17 = vector.load %arg4[%c0_8, %c0_9] : memref<32x128xbf16, #tpu.memory_space<vmem>>, vector<32x128xbf16>
    %cst_10 = arith.constant dense<0.000000e+00> : vector<128x128xf32>
    %18 = tpu.matmul %16, %17, %cst_10 {dimension_numbers = #tpu.dot_dimension_numbers<[1], [0], [0], [1], [0, 0, 1, 1], [], []>} : vector<128x32xbf16>, vector<32x128xbf16>, vector<128x128xf32> -> vector<128x128xf32>
    %19 = vector.extract_strided_slice %0 {offsets = [2, 0], sizes = [1, 128], strides = [1, 1]} : vector<8x128xf32> to vector<1x128xf32>
    %20 = vector.broadcast %19 : vector<1x128xf32> to vector<128x128xf32>
    %21 = arith.addf %18, %20 : vector<128x128xf32>
    %22 = math.tanh %21 : vector<128x128xf32>
    %cst_11 = arith.constant 2.000000e+00 : f32
    %23 = vector.broadcast %cst_11 : f32 to vector<128x128xf32>
    %24 = arith.mulf %23, %22 : vector<128x128xf32>
    %c0_12 = arith.constant 0 : index
    %c0_13 = arith.constant 0 : index
    %25 = vector.load %arg6[%c0_12, %c0_13] : memref<128x128xf32, #tpu.memory_space<vmem>>, vector<128x128xf32>
    tpu.vector_store %arg6[%c0_12, %c0_13], %24 {strides = array<i32>} : memref<128x128xf32, #tpu.memory_space<vmem>>, vector<128x128xf32>,
    return
  }
  func.func @transform_0(%arg0: i32) -> (i32, i32) {
    %c0_i32 = arith.constant 0 : i32
    %c0_i32_0 = arith.constant 0 : i32
    return %arg0, %c0_i32 : i32, i32
  }
  func.func @transform_1(%arg0: i32) -> (i32, i32) {
    %c0_i32 = arith.constant 0 : i32
    %c0_i32_0 = arith.constant 0 : i32
    %c0_i32_1 = arith.constant 0 : i32
    return %c0_i32, %c0_i32_0 : i32, i32
  }
  func.func @transform_2(%arg0: i32) -> (i32, i32) {
    %c0_i32 = arith.constant 0 : i32
    %c0_i32_0 = arith.constant 0 : i32
    %c0_i32_1 = arith.constant 0 : i32
    return %c0_i32, %c0_i32_0 : i32, i32
  }
  func.func @transform_3(%arg0: i32) -> (i32, i32) {
    %c0_i32 = arith.constant 0 : i32
    %c0_i32_0 = arith.constant 0 : i32
    %c0_i32_1 = arith.constant 0 : i32
    return %c0_i32, %c0_i32_0 : i32, i32
  }
  func.func @transform_4(%arg0: i32) -> (i32, i32) {
    %c0_i32 = arith.constant 0 : i32
    %c0_i32_0 = arith.constant 0 : i32
    %c0_i32_1 = arith.constant 0 : i32
    return %c0_i32, %c0_i32_0 : i32, i32
  }
  func.func @transform_5(%arg0: i32) -> (i32, i32) {
    %c0_i32 = arith.constant 0 : i32
    %c0_i32_0 = arith.constant 0 : i32
    return %arg0, %c0_i32 : i32, i32
  }
}

</mosaic_0001>

<bundles_post_ra>
// kernel: tpu_custom_call.1
= control target key start
LH: loop header
LB: loop body
LE: loop exit
PB: predicated region body
PF: predicated region fallthrough
CT: control target
= control target key end

     0   :  { %10 = vsyncpa [#allocation3], 0  ;;  %s1406_s0 = inlined_call_operand.vmem [shape: f32[256,16], index: 0, kind: input, shape index: {}]   ;;  %s1407_s1 = inlined_call_operand.vmem [shape: bf16[16,32], index: 1, kind: input, shape index: {}]   ;;  %s1408_s2 = inlined_call_operand.vmem [shape: bf16[32,32], index: 2, kind: input, shape index: {}]   ;;  %s1409_s3 = inlined_call_operand.vmem [shape: bf16[32,128], index: 3, kind: input, shape index: {}]   ;;  %s1410_s4 = inlined_call_operand.vmem [shape: f32[8,128], index: 4, kind: input, shape index: {}]   ;;  %s1411_s5 = inlined_call_operand.hbm [shape: f32[256,128], index: 5, kind: output, shape index: {}]  }
   0x1   :  { %12 = vsyncpa [#allocation3 + $0x1], 0  ;;  %s1211_s18 = smov 0   ;;  %s1213_s19 = smov 0  }
   0x2   :  { %s1215_s20 = smov 0   ;;  %s1217_s21 = smov 0  }
   0x3 LB: > { %s1232_s22 = sadd.s32 4294967295, %s1176_s21   ;;  %s841_s23 = sadd.s32 4294967294, %s1176_s21   ;;  %s1176_s21 = sphi %s1217_s21, %s1417_s21   ;;  %s1172_s20 = sphi %s1215_s20, %s1416_s20   ;;  %s1168_s19 = sphi %s1213_s19, %s1415_s19   ;;  %s1164_s18 = sphi %s1211_s18, %s1414_s18  }
   0x4   : > { %s1236_s24 = sadd.s32 1, %s1176_s21   ;;  %s135_s25 = sadd.s32 1, %s1172_s20 }
   0x5   : > { %s132_s26 = ssub.s32 %s1176_s21, %s1236_s24  ;;  %p145_p0 = scmp.ne.s32.totalorder %s1172_s20, %s1168_s19 }
   0x6   : > { %p133_p1 = scmp.eq.s32.totalorder %s132_s26, 0  ;;  %p146_p2 = scmp.eq.s32.totalorder %s1232_s22, 1 }
   0x7   : > { %p151_p3 = scmp.ne.s32.totalorder %s1168_s19, %s1164_s18  ;;  %p152_p4 = scmp.eq.s32.totalorder %s841_s23, 1 }
   0x8   : > { %s1247_s27 = scalar_select %p133_p1, %s1172_s20, %s135_s25  }
   0x9   : > { %p1249_p5 = por %p146_p2, %p145_p0  ;;  %p1253_p6 = por %p152_p4, %p151_p3 }
   0xa   : > { %p844_p7 = scmp.ge.s32.totalorder %s1176_s21, 1  ;;  %p191_p8 = scmp.lt.s32.totalorder %s1176_s21, 3 }
   0xc   : > { %p192_p9 = pnand %p844_p7, %p191_p8 }
   0xd   : > { %v1013_v0 = vld [vmem:[%s1407_s1] sm:$0xff] (!%p192_p9)   ;;  %s846_s7 = sshll.u32 (!%p192_p9), %s1232_s22, 4  ;;  %vm264_vm0 = vcmask (!%p192_p9), 130048   ;;  %v1015_v26 = vld [vmem:[%s1408_s2 + $0x8] sm:$0xff] (!%p192_p9)   ;;  %v254_v27 = vlaneseq (!%p192_p9)  ;;  %vm430_vm1 = vcmask (!%p192_p9), 261120   ;;  %s216_s6 = sand.u32 (!%p192_p9), 1, %s1168_s19  }
   0xe   : > { %195 = sbr.rel (%p192_p9) target bundleno = 759 (0x2f7), region = 40  ;;  %p220_p10 = scmp.lt.s32.totalorder (!%p192_p9), %s846_s7, 31  ;;  %912 = vmatprep.subr.bf16.mxu0 (!%p192_p9), %v1013_v0  ;;  %970 = vmatprep.subr.bf16.mxu1 (!%p192_p9), %v1013_v0  ;;  %v1014_v25 = vld [vmem:[%s1408_s2] sm:$0xff] (!%p192_p9)  }
   0xf   : > { %913 = vmatpush3.bf16.msra.mxu0 (!%p192_p9), %v1013_v0  ;;  %971 = vmatpush3.bf16.msra.mxu1 (!%p192_p9), %v1013_v0  ;;  %v1280_v28 = vshrl.u32 (!%p192_p9), %v254_v27, 7  ;;  %v1286_v30 = vld [vmem:[%s1410_s4] sm:$0xff] (!%p192_p9)  ;;  %s882_s9 = sshll.u32 (!%p192_p9), %s1232_s22, 11  ;;  %s1365_s22 = scalar_lea.sflag (!%p192_p9), [#allocation3], %s216_s6 }
  0x10   : > { %930 = vmatprep.subr.bf16.mxu1 (!%p192_p9), %v1014_v25  ;;  %s1356_s13 = scalar_lea.hbm (!%p192_p9), %s1411_s5, %s882_s9  ;;  %s1178_s15 = smov (!%p192_p9), [#allocation2]  }
  0x11   : > { %v256_v29 = vsub.s32 (!%p192_p9), 0, %v1280_v28  ;;  %s1118_s16 = sshll.u32 (!%p192_p9), %s1178_s15, 4  ;;  %s1119_s16 = int_to_ptr.vmem [resolvable:$false] %s1118_s16 }
  0x12   : > { %s1120_s17 = scalar_lea.vmem (!%p192_p9), %s1119_s16, 4096 }
  0x13   : > { %v257_v31 = vrot.slane (!%p192_p9), %v1286_v30, %v256_v29 }
  0x15   : > { %s1419_s7 = smov (!%p220_p10, %s846_s7), 31 }
  0x16   : > { %s847_s8 = sshll.u32 %s1419_s7, 3  ;;  %s845_s7 = sshll.u32 %s216_s6, 7 }
  0x17   : > { %s223_s11 = scalar_lea.vmem %s1406_s0, %s847_s8  ;;  %s1328_s8 = scalar_lea.vmem [#allocation2], %s845_s7 }
  0x18   : > { %v228_v1 = vld [vmem:[%s223_s11] sm:$0xff]  ;;  %v229_v2 = vld [vmem:[%s223_s11 + $0x8] sm:$0xff]  ;;  %v230_v3 = vld [vmem:[%s223_s11 + $0x10] sm:$0xff]  ;;  %s779_s10 = sshll.u32 %s1328_s8, 4  ;;  %s1358_s10 = int_to_ptr.vmem [resolvable:$true] %s779_s10 }
  0x19   : > { %v244_v4 = vpack.c.bf16 %v229_v2, %v228_v1  ;;  %v231_v5 = vld [vmem:[%s223_s11 + $0x18] sm:$0xff]  ;;  %v232_v6 = vld [vmem:[%s223_s11 + $0x20] sm:$0xff]  ;;  %v233_v7 = vld [vmem:[%s223_s11 + $0x28] sm:$0xff]  ;;  %s1114_s14 = scalar_lea.vmem %s1358_s10, 2048  ;;  %p1121_p0 = scmp.lt.s32.totalorder %s1358_s10, %s1119_s16 }
  0x1a   : > { %v245_v8 = vpack.c.bf16 %v231_v5, %v230_v3  ;;  %v246_v9 = vpack.c.bf16 %v233_v7, %v232_v6  ;;  %v236_v10 = vld [vmem:[%s223_s11 + $0x40] sm:$0xff]  ;;  %v237_v11 = vld [vmem:[%s223_s11 + $0x48] sm:$0xff]  ;;  %v238_v12 = vld [vmem:[%s223_s11 + $0x50] sm:$0xff]  ;;  %p1115_p11 = scmp.ne.s32.totalorder %s1358_s10, %s1114_s14  ;;  %p1122_p1 = scmp.lt.s32.totalorder %s1120_s17, %s1114_s14 }
  0x1b   : > { %914 = vmatprep.mubr.msk.bf16.mxu0 %vm264_vm0, %v244_v4  ;;  %v239_v13 = vld [vmem:[%s223_s11 + $0x58] sm:$0xff]  ;;  %v248_v14 = vpack.c.bf16 %v237_v11, %v236_v10  ;;  %v240_v16 = vld [vmem:[%s223_s11 + $0x60] sm:$0xff]  ;;  %v241_v17 = vld [vmem:[%s223_s11 + $0x68] sm:$0xff] }
  0x1c   : > { %915 = vmatmul.mubr.msk.bf16.vlgmr.msra.gmra.mrb[0].mxu0 %vm264_vm0, %v245_v8  ;;  %v249_v15 = vpack.c.bf16 %v239_v13, %v238_v12  ;;  %v234_v18 = vld [vmem:[%s223_s11 + $0x30] sm:$0xff]  ;;  %v235_v19 = vld [vmem:[%s223_s11 + $0x38] sm:$0xff]  ;;  %v250_v20 = vpack.c.bf16 %v241_v17, %v240_v16  ;;  %p1116_p12 = pnand %p1115_p11, %p1249_p5  ;;  %p1123_p2 = por %p1122_p1, %p1121_p0 }
  0x1d   : > { %918 = vmatprep.mubr.msk.bf16.mxu0 %vm264_vm0, %v246_v9  ;;  %922 = vmatprep.mubr.msk.bf16.mxu1 %vm264_vm0, %v248_v14  ;;  %v247_v21 = vpack.c.bf16 %v235_v19, %v234_v18  ;;  %v242_v22 = vld [vmem:[%s223_s11 + $0x70] sm:$0xff]  ;;  %v243_v23 = vld [vmem:[%s223_s11 + $0x78] sm:$0xff] }
  0x1e   : > { %923 = vmatmul.mubr.msk.bf16.vlgmr.msra.gmra.mrb[0].mxu1 %vm264_vm0, %v249_v15  ;;  %v251_v24 = vpack.c.bf16 %v243_v23, %v242_v22  ;;  %p1117_p13 = pneg %p1116_p12 }
  0x1f   : > { %926 = vmatprep.mubr.msk.bf16.mxu1 %vm264_vm0, %v250_v20  ;;  %931 = vmatpush3.bf16.msra.mxu1 %v1014_v25  ;;  %v1017_v25 = vld [vmem:[%s1409_s3 + $0x8] sm:$0xff]  }
  0x20   : > { %932 = vmatprep.subr.bf16.mxu1 %v1015_v26  ;;  %p1124_p3 = pnand %p1123_p2, %p1117_p13 }
  0x23   : > { %933 = vmatpush3.bf16.msra.mxu1 %v1015_v26  ;;  %v416_v26 = vsub.s32 1, %v1280_v28 }
  0x24   : > { %919 = vmatmul.mubr.msk.bf16.gmra.mrb[4].mxu0 %vm264_vm0, %v247_v21 }
  0x25   : > { %v417_v27 = vrot.slane %v1286_v30, %v416_v26 }
  0x26   : > { %927 = vmatmul.mubr.msk.bf16.gmra.mrb[4].mxu1 %vm264_vm0, %v251_v24  ;;  %v1016_v24 = vld [vmem:[%s1409_s3] sm:$0xff]  }
  0x27   : > { %950 = vmatprep.subr.bf16.mxu0 %v1016_v24 }
  0x28   : > { %951 = vmatpush3.bf16.msra.mxu0 %v1016_v24 }
  0x29   : > { %952 = vmatprep.subr.bf16.mxu0 %v1017_v25 }
  0x2c   : > { %953 = vmatpush3.bf16.msra.mxu0 %v1017_v25 }
  0xef   : > { %v916_v32 = vpop.f32.mrb[0].mxu0 }
  0xf0   : > { %v332_v33 = vadd.f32 %v916_v32, %v257_v31  ;;  %v323_v34 = vpop.f32.mrb[1].mxu0 }
  0xf1   : > { %v324_v35 = vadd.f32 %v323_v34, %v257_v31  ;;  %v917_v36 = vpop.f32.mrb[2].mxu0  ;;  %v924_v39 = vpop.f32.mrb[0].mxu1 }
  0xf2   : > { %1018 = vtanh.f32 %v332_v33  ;;  %v335_v37 = vadd.f32 %v917_v36, %v257_v31  ;;  %v326_v38 = vpop.f32.mrb[3].mxu0  ;;  %v364_v41 = vadd.f32 %v924_v39, %v257_v31  ;;  %v355_v42 = vpop.f32.mrb[1].mxu1 }
  0xf3   : > { %1020 = vtanh.f32 %v324_v35  ;;  %v327_v40 = vadd.f32 %v326_v38, %v257_v31  ;;  %v356_v43 = vadd.f32 %v355_v42, %v257_v31  ;;  %v925_v44 = vpop.f32.mrb[2].mxu1 }
  0xf4   : > { %1022 = vtanh.f32 %v335_v37  ;;  %v367_v45 = vadd.f32 %v925_v44, %v257_v31  ;;  %v358_v46 = vpop.f32.mrb[3].mxu1 }
  0xf5   : > { %1024 = vtanh.f32 %v327_v40  ;;  %v359_v47 = vadd.f32 %v358_v46, %v257_v31 }
  0xf6   : > { %1026 = vtanh.f32 %v364_v41 }
  0xf7   : > { %v920_v48 = vpop.f32.mrb[4].mxu0  ;;  %1028 = vtanh.f32 %v356_v43 }
  0xf8   : > { %v348_v49 = vadd.f32 %v920_v48, %v257_v31  ;;  %v339_v50 = vpop.f32.mrb[5].mxu0  ;;  %1030 = vtanh.f32 %v367_v45 }
  0xf9   : > { %v340_v51 = vadd.f32 %v339_v50, %v257_v31  ;;  %v921_v52 = vpop.f32.mrb[6].mxu0  ;;  %1032 = vtanh.f32 %v359_v47  ;;  %v928_v55 = vpop.f32.mrb[4].mxu1 }
  0xfa   : > { %1034 = vtanh.f32 %v348_v49  ;;  %v351_v53 = vadd.f32 %v921_v52, %v257_v31  ;;  %v342_v54 = vpop.f32.mrb[7].mxu0  ;;  %v380_v57 = vadd.f32 %v928_v55, %v257_v31  ;;  %v371_v58 = vpop.f32.mrb[5].mxu1 }
  0xfb   : > { %1036 = vtanh.f32 %v340_v51  ;;  %v343_v56 = vadd.f32 %v342_v54, %v257_v31  ;;  %v372_v60 = vadd.f32 %v371_v58, %v257_v31  ;;  %v929_v61 = vpop.f32.mrb[6].mxu1 }
  0xfc   : > { %v1019_v59 = vpop.eup %1018  ;;  %1038 = vtanh.f32 %v351_v53  ;;  %v383_v63 = vadd.f32 %v929_v61, %v257_v31  ;;  %v374_v0 = vpop.f32.mrb[7].mxu1 }
  0xfd   : > { %v1021_v62 = vpop.eup %1020  ;;  %1040 = vtanh.f32 %v343_v56  ;;  %v375_v2 = vadd.f32 %v374_v0, %v257_v31 }
  0xfe   : > { %v1023_v1 = vpop.eup %1022  ;;  %1042 = vtanh.f32 %v380_v57 }
  0xff   : > { %v1025_v3 = vpop.eup %1024  ;;  %v403_v4 = vpack.c.bf16 %v1023_v1, %v1019_v59  ;;  %1044 = vtanh.f32 %v372_v60 }
 0x100   : > { %v1027_v5 = vpop.eup %1026  ;;  %v402_v6 = vpack.c.bf16 %v1025_v3, %v1021_v62  ;;  %1046 = vtanh.f32 %v383_v63 }
 0x101   : > { %v1029_v7 = vpop.eup %1028  ;;  %1048 = vtanh.f32 %v375_v2 }
 0x102   : > { %v1031_v8 = vpop.eup %1030  ;;  %934 = vmatprep.mubr.msk.bf16.mxu1 %vm430_vm1, %v402_v6 }
 0x103   : > { %v1033_v9 = vpop.eup %1032  ;;  %935 = vmatmul.mubr.msk.bf16.vlgmr.msra.gmra.mrb[8].mxu1 %vm430_vm1, %v403_v4  ;;  %v407_v10 = vpack.c.bf16 %v1031_v8, %v1027_v5 }
 0x104   : > { %v1035_v11 = vpop.eup %1034  ;;  %v406_v12 = vpack.c.bf16 %v1033_v9, %v1029_v7 }
 0x105   : > { %v1037_v13 = vpop.eup %1036 }
 0x106   : > { %v1039_v14 = vpop.eup %1038 }
 0x107   : > { %v1041_v15 = vpop.eup %1040  ;;  %v405_v16 = vpack.c.bf16 %v1039_v14, %v1035_v11 }
 0x108   : > { %v1043_v17 = vpop.eup %1042  ;;  %v404_v18 = vpack.c.bf16 %v1041_v15, %v1037_v13 }
 0x109   : > { %v1045_v19 = vpop.eup %1044 }
 0x10a   : > { %v1047_v20 = vpop.eup %1046  ;;  %938 = vmatprep.mubr.msk.bf16.mxu1 %vm430_vm1, %v404_v18 }
 0x10b   : > { %v1049_v21 = vpop.eup %1048  ;;  %939 = vmatmul.mubr.msk.bf16.gmra.mrb[12].mxu1 %vm430_vm1, %v405_v16  ;;  %v409_v22 = vpack.c.bf16 %v1047_v20, %v1043_v17 }
 0x10c   : > { %942 = vmatprep.mubr.msk.bf16.mxu1 %vm430_vm1, %v406_v12  ;;  %v408_v23 = vpack.c.bf16 %v1049_v21, %v1045_v19 }
 0x113   : > { %943 = vmatmul.mubr.msk.bf16.gmra.mrb[16].mxu1 %vm430_vm1, %v407_v10 }
 0x114   : > { %946 = vmatprep.mubr.msk.bf16.mxu1 %vm430_vm1, %v408_v23 }
 0x11b   : > { %947 = vmatmul.mubr.msk.bf16.gmra.mrb[20].mxu1 %vm430_vm1, %v409_v22  ;;  %v582_v22 = vsub.s32 2, %v1280_v28 }
 0x11d   : > { %v1315_v23 = vrot.slane %v1286_v30, %v582_v22 }
 0x1d6   : > { %v936_v29 = vpop.f32.mrb[8].mxu1 }
 0x1d7   : > { %v498_v31 = vadd.f32 %v936_v29, %v417_v27  ;;  %v489_v32 = vpop.f32.mrb[9].mxu1 }
 0x1d8   : > { %v490_v33 = vadd.f32 %v489_v32, %v417_v27  ;;  %v937_v34 = vpop.f32.mrb[10].mxu1 }
 0x1d9   : > { %1050 = vtanh.f32 %v498_v31  ;;  %v501_v35 = vadd.f32 %v937_v34, %v417_v27  ;;  %v492_v36 = vpop.f32.mrb[11].mxu1 }
 0x1da   : > { %1052 = vtanh.f32 %v490_v33  ;;  %v493_v37 = vadd.f32 %v492_v36, %v417_v27 }
 0x1db   : > { %1054 = vtanh.f32 %v501_v35 }
 0x1dc   : > { %1056 = vtanh.f32 %v493_v37 }
 0x1de   : > { %v940_v38 = vpop.f32.mrb[12].mxu1 }
 0x1df   : > { %v514_v39 = vadd.f32 %v940_v38, %v417_v27  ;;  %v505_v40 = vpop.f32.mrb[13].mxu1 }
 0x1e0   : > { %v506_v41 = vadd.f32 %v505_v40, %v417_v27  ;;  %v941_v42 = vpop.f32.mrb[14].mxu1 }
 0x1e1   : > { %1058 = vtanh.f32 %v514_v39  ;;  %v517_v43 = vadd.f32 %v941_v42, %v417_v27  ;;  %v508_v44 = vpop.f32.mrb[15].mxu1 }
 0x1e2   : > { %1060 = vtanh.f32 %v506_v41  ;;  %v509_v45 = vadd.f32 %v508_v44, %v417_v27 }
 0x1e3   : > { %v1051_v46 = vpop.eup %1050  ;;  %1062 = vtanh.f32 %v517_v43 }
 0x1e4   : > { %v1053_v47 = vpop.eup %1052  ;;  %1064 = vtanh.f32 %v509_v45 }
 0x1e5   : > { %v1055_v48 = vpop.eup %1054 }
 0x1e6   : > { %v1057_v49 = vpop.eup %1056  ;;  %v569_v50 = vpack.c.bf16 %v1055_v48, %v1051_v46  ;;  %v944_v51 = vpop.f32.mrb[16].mxu1 }
 0x1e7   : > { %v530_v52 = vadd.f32 %v944_v51, %v417_v27  ;;  %v521_v53 = vpop.f32.mrb[17].mxu1  ;;  %v568_v54 = vpack.c.bf16 %v1057_v49, %v1053_v47 }
 0x1e8   : > { %v522_v55 = vadd.f32 %v521_v53, %v417_v27  ;;  %v945_v56 = vpop.f32.mrb[18].mxu1 }
 0x1e9   : > { %1066 = vtanh.f32 %v530_v52  ;;  %v533_v57 = vadd.f32 %v945_v56, %v417_v27  ;;  %v524_v58 = vpop.f32.mrb[19].mxu1  ;;  %954 = vmatprep.mubr.msk.bf16.mxu0 %vm430_vm1, %v568_v54 }
 0x1ea   : > { %1068 = vtanh.f32 %v522_v55  ;;  %v525_v59 = vadd.f32 %v524_v58, %v417_v27  ;;  %955 = vmatmul.mubr.msk.bf16.vlgmr.msra.gmra.mrb[8].mxu0 %vm430_vm1, %v569_v50 }
 0x1eb   : > { %v1059_v60 = vpop.eup %1058  ;;  %1070 = vtanh.f32 %v533_v57 }
 0x1ec   : > { %v1061_v61 = vpop.eup %1060  ;;  %1072 = vtanh.f32 %v525_v59 }
 0x1ed   : > { %v1063_v62 = vpop.eup %1062 }
 0x1ee   : > { %v1065_v63 = vpop.eup %1064  ;;  %v948_v0 = vpop.f32.mrb[20].mxu1  ;;  %v571_v1 = vpack.c.bf16 %v1063_v62, %v1059_v60 }
 0x1ef   : > { %v546_v2 = vadd.f32 %v948_v0, %v417_v27  ;;  %v537_v3 = vpop.f32.mrb[21].mxu1  ;;  %v570_v4 = vpack.c.bf16 %v1065_v63, %v1061_v61 }
 0x1f0   : > { %v538_v5 = vadd.f32 %v537_v3, %v417_v27  ;;  %v949_v6 = vpop.f32.mrb[22].mxu1 }
 0x1f1   : > { %1074 = vtanh.f32 %v546_v2  ;;  %v549_v7 = vadd.f32 %v949_v6, %v417_v27  ;;  %v540_v8 = vpop.f32.mrb[23].mxu1  ;;  %958 = vmatprep.mubr.msk.bf16.mxu0 %vm430_vm1, %v570_v4 }
 0x1f2   : > { %1076 = vtanh.f32 %v538_v5  ;;  %v541_v9 = vadd.f32 %v540_v8, %v417_v27  ;;  %959 = vmatmul.mubr.msk.bf16.gmra.mrb[12].mxu0 %vm430_vm1, %v571_v1 }
 0x1f3   : > { %v1067_v10 = vpop.eup %1066  ;;  %1078 = vtanh.f32 %v549_v7 }
 0x1f4   : > { %v1069_v11 = vpop.eup %1068  ;;  %1080 = vtanh.f32 %v541_v9 }
 0x1f5   : > { %v1071_v12 = vpop.eup %1070 }
 0x1f6   : > { %v1073_v13 = vpop.eup %1072  ;;  %v573_v14 = vpack.c.bf16 %v1071_v12, %v1067_v10 }
 0x1f7   : > { %v572_v15 = vpack.c.bf16 %v1073_v13, %v1069_v11 }
 0x1f9   : > { %962 = vmatprep.mubr.msk.bf16.mxu0 %vm430_vm1, %v572_v15 }
 0x1fa   : > { %963 = vmatmul.mubr.msk.bf16.gmra.mrb[16].mxu0 %vm430_vm1, %v573_v14 }
 0x1fb   : > { %v1075_v16 = vpop.eup %1074 }
 0x1fc   : > { %v1077_v17 = vpop.eup %1076 }
 0x1fd   : > { %v1079_v18 = vpop.eup %1078 }
 0x1fe   : > { %v1081_v19 = vpop.eup %1080  ;;  %v575_v20 = vpack.c.bf16 %v1079_v18, %v1075_v16 }
 0x1ff   : > { %v574_v21 = vpack.c.bf16 %v1081_v19, %v1077_v17 }
 0x201   : > { %966 = vmatprep.mubr.msk.bf16.mxu0 %vm430_vm1, %v574_v21 }
 0x202   : > { %967 = vmatmul.mubr.msk.bf16.gmra.mrb[20].mxu0 %vm430_vm1, %v575_v20 }
 0x2bd   : > { %v956_v24 = vpop.f32.mrb[8].mxu0 }
 0x2be   : > { %v663_v25 = vadd.f32 %v956_v24, %v1315_v23  ;;  %v654_v26 = vpop.f32.mrb[9].mxu0 }
 0x2bf   : > { %v655_v27 = vadd.f32 %v654_v26, %v1315_v23  ;;  %v957_v29 = vpop.f32.mrb[10].mxu0 }
 0x2c0   : > { %1082 = vtanh.f32 %v663_v25  ;;  %v666_v31 = vadd.f32 %v957_v29, %v1315_v23  ;;  %v657_v32 = vpop.f32.mrb[11].mxu0 }
 0x2c1   : > { %1084 = vtanh.f32 %v655_v27  ;;  %v658_v33 = vadd.f32 %v657_v32, %v1315_v23 }
 0x2c2   : > { %1086 = vtanh.f32 %v666_v31 }
 0x2c3   : > { %1088 = vtanh.f32 %v658_v33 }
 0x2c5   : > { %v960_v28 = vpop.f32.mrb[12].mxu0 }
 0x2c6   : > { %v679_v30 = vadd.f32 %v960_v28, %v1315_v23  ;;  %v670_v34 = vpop.f32.mrb[13].mxu0 }
 0x2c7   : > { %v671_v35 = vadd.f32 %v670_v34, %v1315_v23  ;;  %v961_v36 = vpop.f32.mrb[14].mxu0 }
 0x2c8   : > { %1090 = vtanh.f32 %v679_v30  ;;  %v682_v37 = vadd.f32 %v961_v36, %v1315_v23  ;;  %v673_v38 = vpop.f32.mrb[15].mxu0 }
 0x2c9   : > { %1092 = vtanh.f32 %v671_v35  ;;  %v674_v39 = vadd.f32 %v673_v38, %v1315_v23 }
 0x2ca   : > { %v1083_v40 = vpop.eup %1082  ;;  %1094 = vtanh.f32 %v682_v37 }
 0x2cb   : > { %v1085_v41 = vpop.eup %1084  ;;  %v735_v42 = vmul.f32 2.0, %v1083_v40  ;;  %1096 = vtanh.f32 %v674_v39 }
 0x2cc   : > { %v1087_v43 = vpop.eup %1086  ;;  %v733_v44 = vmul.f32 2.0, %v1085_v41 }
 0x2cd   : > { %v1089_v45 = vpop.eup %1088  ;;  %751 = vst [vmem:[%s1328_s8 + $0x10] sm:$0xff] %v735_v42  ;;  %v736_v46 = vmul.f32 2.0, %v1087_v43  ;;  %v964_v47 = vpop.f32.mrb[16].mxu0 }
 0x2ce   : > { %749 = vst [vmem:[%s1328_s8] sm:$0xff] %v733_v44  ;;  %v734_v48 = vmul.f32 2.0, %v1089_v45  ;;  %v695_v49 = vadd.f32 %v964_v47, %v1315_v23  ;;  %v686_v50 = vpop.f32.mrb[17].mxu0 }
 0x2cf   : > { %752 = vst [vmem:[%s1328_s8 + $0x18] sm:$0xff] %v736_v46  ;;  %v687_v51 = vadd.f32 %v686_v50, %v1315_v23  ;;  %v965_v52 = vpop.f32.mrb[18].mxu0 }
 0x2d0   : > { %750 = vst [vmem:[%s1328_s8 + $0x8] sm:$0xff] %v734_v48  ;;  %1098 = vtanh.f32 %v695_v49  ;;  %v698_v53 = vadd.f32 %v965_v52, %v1315_v23  ;;  %v689_v54 = vpop.f32.mrb[19].mxu0 }
 0x2d1   : > { %1100 = vtanh.f32 %v687_v51  ;;  %v690_v55 = vadd.f32 %v689_v54, %v1315_v23 }
 0x2d2   : > { %v1091_v56 = vpop.eup %1090  ;;  %1102 = vtanh.f32 %v698_v53 }
 0x2d3   : > { %v1093_v57 = vpop.eup %1092  ;;  %v739_v58 = vmul.f32 2.0, %v1091_v56  ;;  %1104 = vtanh.f32 %v690_v55 }
 0x2d4   : > { %v1095_v59 = vpop.eup %1094  ;;  %v737_v60 = vmul.f32 2.0, %v1093_v57 }
 0x2d5   : > { %v1097_v61 = vpop.eup %1096  ;;  %755 = vst [vmem:[%s1328_s8 + $0x30] sm:$0xff] %v739_v58  ;;  %v740_v62 = vmul.f32 2.0, %v1095_v59  ;;  %v968_v63 = vpop.f32.mrb[20].mxu0 }
 0x2d6   : > { %753 = vst [vmem:[%s1328_s8 + $0x20] sm:$0xff] %v737_v60  ;;  %v738_v0 = vmul.f32 2.0, %v1097_v61  ;;  %v711_v1 = vadd.f32 %v968_v63, %v1315_v23  ;;  %v702_v2 = vpop.f32.mrb[21].mxu0 }
 0x2d7   : > { %756 = vst [vmem:[%s1328_s8 + $0x38] sm:$0xff] %v740_v62  ;;  %v703_v3 = vadd.f32 %v702_v2, %v1315_v23  ;;  %v969_v4 = vpop.f32.mrb[22].mxu0 }
 0x2d8   : > { %754 = vst [vmem:[%s1328_s8 + $0x28] sm:$0xff] %v738_v0  ;;  %1106 = vtanh.f32 %v711_v1  ;;  %v714_v5 = vadd.f32 %v969_v4, %v1315_v23  ;;  %v705_v6 = vpop.f32.mrb[23].mxu0 }
 0x2d9   : > { %1108 = vtanh.f32 %v703_v3  ;;  %v706_v7 = vadd.f32 %v705_v6, %v1315_v23 }
 0x2da   : > { %v1099_v8 = vpop.eup %1098  ;;  %1110 = vtanh.f32 %v714_v5 }
 0x2db   : > { %v1101_v9 = vpop.eup %1100  ;;  %v743_v10 = vmul.f32 2.0, %v1099_v8  ;;  %1112 = vtanh.f32 %v706_v7 }
 0x2dc   : > { %v1103_v11 = vpop.eup %1102  ;;  %v741_v12 = vmul.f32 2.0, %v1101_v9 }
 0x2dd   : > { %v1105_v13 = vpop.eup %1104  ;;  %759 = vst [vmem:[%s1328_s8 + $0x50] sm:$0xff] %v743_v10  ;;  %v744_v14 = vmul.f32 2.0, %v1103_v11 }
 0x2de   : > { %757 = vst [vmem:[%s1328_s8 + $0x40] sm:$0xff] %v741_v12  ;;  %v742_v15 = vmul.f32 2.0, %v1105_v13 }
 0x2df   : > { %760 = vst [vmem:[%s1328_s8 + $0x58] sm:$0xff] %v744_v14 }
 0x2e0   : > { %758 = vst [vmem:[%s1328_s8 + $0x48] sm:$0xff] %v742_v15 }
 0x2e2   : > { %v1107_v16 = vpop.eup %1106 }
 0x2e3   : > { %v1109_v17 = vpop.eup %1108  ;;  %v747_v18 = vmul.f32 2.0, %v1107_v16 }
 0x2e4   : > { %v1111_v19 = vpop.eup %1110  ;;  %v745_v20 = vmul.f32 2.0, %v1109_v17 }
 0x2e5   : > { %v1113_v21 = vpop.eup %1112  ;;  %763 = vst [vmem:[%s1328_s8 + $0x70] sm:$0xff] %v747_v18  ;;  %v748_v22 = vmul.f32 2.0, %v1111_v19 }
 0x2e6   : > { %761 = vst [vmem:[%s1328_s8 + $0x60] sm:$0xff] %v745_v20  ;;  %v746_v23 = vmul.f32 2.0, %v1113_v21 }
 0x2e7   : > { %764 = vst [vmem:[%s1328_s8 + $0x78] sm:$0xff] %v748_v22 }
 0x2e8   : > { %762 = vst [vmem:[%s1328_s8 + $0x68] sm:$0xff] %v746_v23 }
 0x2e9   : > { %1127 = shalt.err (!%p1124_p3)
}
 0x2ea   : > { %s1128_s23 = scalar_lea.hbm %s1356_s13, 2048  ;;  %s1132_s30 = scalar_lea.hbm %s1411_s5, 4096 }
 0x2eb   : > { %p1129_p4 = scmp.ne.s32.totalorder %s1356_s13, %s1128_s23  ;;  %p1133_p9 = scmp.lt.u32.totalorder %s1356_s13, %s1411_s5 }
 0x2ec   : > { %p1134_p10 = scmp.lt.u32.totalorder %s1132_s30, %s1128_s23  ;;  %p1136_p12 = scmp.lt.u32.totalorder %s1128_s23, %s1356_s13 }
 0x2ed   : > { %p1130_p7 = pnand %p1129_p4, %p1249_p5 }
 0x2ee   : > { %p1135_p11 = por %p1134_p10, %p1133_p9 }
 0x2ef   : > { %p1131_p8 = pneg %p1130_p7 }
 0x2f0   : > { %p1137_p13 = por %p1136_p12, %p1135_p11 }
 0x2f2   : > { %p1138_p0 = pnand %p1137_p13, %p1131_p8 }
 0x2f4   : > { %1141 = shalt.err (!%p1138_p0)
}
 0x2f5   : > { %s1179_s8 = smov 128   ;;  %s1180_s9 = smov 8  }
 0x2f6   : > { %972 = dma.vmem_to_hbm [thread:$0]  (%p1249_p5), %s1358_s10, 2048, %s1356_s13, %s1365_s22, %s1179_s8, %s1179_s8, %s1180_s9  }
 0x2f7 PF: > { %p978_p1 = scmp.ge.s32.totalorder %s1176_s21, 2  ;;  %s794_s11 = sand.u32 1, %s1164_s18  }
 0x2f8   : > { %s795_s12 = scalar_lea.sflag [#allocation3], %s794_s11 }
 0x2f9   : > { %p975_p2 = pnand %p978_p1, %p1253_p6 }
 0x2fb   : > { %1159 = dma.done.wait (!%p975_p2), %s795_s12, 2048  }
 0x2fc   : > { %1161 = vsyncadd (!%p975_p2), %s795_s12, 4294965248  ;;  %p15_p3 = scmp.ge.s32.totalorder %s1236_s24, 4   ;;  %s1414_s18 = smov %s1168_s19 }
 0x2fd   : > { %s1415_s19 = smov %s1172_s20  ;;  %s1416_s20 = smov %s1247_s27 }
 0x2fe   : > { %s1417_s21 = smov %s1236_s24  ;;  %17 = sbr.rel (!%p15_p3) target bundleno = 3 (0x3), region = 75 }
 0x305   :  { %800 = vsyncpa [#allocation3], 1 }
 0x306   :  { %802 = vsyncpa [#allocation3 + $0x1], 1 }

</bundles_post_ra>
